<compile_context>
chip_gen: v5e
topology: v5e:2x2
jax: 0.10.0
libtpu: 0.0.40
codegen_flags: <defaults>
</compile_context>

<pallas_src>
import jax
import jax.numpy as jnp
from jax.experimental import pallas as pl
from jax.experimental.pallas import tpu as pltpu

_LANES = 128           # lane width (fast axis)
_MAX_TILE_ROWS = 8192  # (8192,128) f32 = 4 MiB per buffer


def _bce_kernel(s_ref, t_ref, o_ref):
    s = s_ref[...].astype(jnp.float32)
    # Targets are hard class indices in {0,1}: select instead of convert+mul.
    picked = jnp.where(t_ref[...] != 0, s, jnp.zeros_like(s))
    # loss = logsumexp([0, s]) - picked, in the stable softplus form:
    #      = max(s, 0) + log1p(exp(-|s|)) - picked
    softplus = jnp.maximum(s, 0.0) + jnp.log1p(jnp.exp(-jnp.abs(s)))
    o_ref[...] = (softplus - picked).astype(o_ref.dtype)


def binary_cross_entropy_loss(input_score, target_tensor, out_dtype=jnp.float32):
    """Pallas equivalent of BinaryCrossEntropyLoss(reduction='none').forward.

    `input_score` are logits (any float dtype), `target_tensor` class indices
    in {0, 1} (any integer / bool dtype).  Returns a flat (N,) array.
    """
    s = jnp.ravel(input_score)            # keep native dtype; cast in-kernel
    t = jnp.ravel(target_tensor)          # keep native (possibly narrow) dtype
    n = s.shape[0]

    # Pad only to the next multiple of 128 lanes (minimum required for a
    # lane-dense 2-D view).  Row axis stays ragged; Pallas handles the
    # partial last grid block for this purely elementwise op.
    n_pad = ((n + _LANES - 1) // _LANES) * _LANES
    if n_pad != n:
        s = jnp.pad(s, (0, n_pad - n))
        t = jnp.pad(t, (0, n_pad - n))

    rows = n_pad // _LANES
    s2 = s.reshape(rows, _LANES)
    t2 = t.reshape(rows, _LANES)

    # Large blocks to amortize per-step overhead; clamp to the array for
    # small N (block == full array satisfies the (8,128) divisibility rule).
    tile_rows = min(_MAX_TILE_ROWS, rows)
    grid = (pl.cdiv(rows, tile_rows),)

    # Explicit VMEM budget: 2 buffers per array (double-buffering) + slack.
    # Generation-agnostic: raises v5e's 16 MiB default when needed, and is
    # always far below physical VMEM (>= 64 MiB) on every generation.
    bytes_per_step = tile_rows * _LANES * (
        jnp.dtype(s2.dtype).itemsize
        + jnp.dtype(t2.dtype).itemsize
        + jnp.dtype(out_dtype).itemsize)
    vmem_budget = int(2 * bytes_per_step + (4 << 20))

    out2 = pl.pallas_call(
        _bce_kernel,
        out_shape=jax.ShapeDtypeStruct((rows, _LANES), out_dtype),
        grid=grid,
        in_specs=[
            pl.BlockSpec((tile_rows, _LANES), lambda i: (i, 0)),
            pl.BlockSpec((tile_rows, _LANES), lambda i: (i, 0)),
        ],
        out_specs=pl.BlockSpec((tile_rows, _LANES), lambda i: (i, 0)),
        compiler_params=pltpu.CompilerParams(
            # "parallel" lets the 1-D row-block axis shard across the two
            # TensorCores on v7x; it is a no-op on single-TC v5e/v6e.
            dimension_semantics=("parallel",),
            vmem_limit_bytes=vmem_budget),
    )(s2, t2)

    out_flat = out2.reshape(n_pad)
    return out_flat if n_pad == n else out_flat[:n]


def _reference(input_score, target_tensor):
    """Pure-JAX reference of the PyTorch module (for verification)."""
    s = jnp.ravel(input_score).astype(jnp.float32)
    t = jnp.ravel(target_tensor).astype(jnp.int32)
    logits = jnp.stack([jnp.zeros_like(s), s], axis=-1)        # (N, 2)
    logz = jax.scipy.special.logsumexp(logits, axis=-1)
    picked = jnp.take_along_axis(logits, t[:, None], axis=-1)[:, 0]
    return logz - picked


if __name__ == "__main__":
    key = jax.random.PRNGKey(0)
    k1, k2, k3, k4 = jax.random.split(key, 4)

    # Small shapes consistent with the forward (any shape is flattened).
    shape = (2, 4, 16, 16)  # 2048 elements -> lane-aligned fast path
    input_score = jax.random.normal(k1, shape, dtype=jnp.float32)
    target_tensor = jax.random.randint(k2, shape, 0, 2, dtype=jnp.int32)

    out = binary_cross_entropy_loss(input_score, target_tensor)
    out = jax.block_until_ready(out)
    ref = _reference(input_score, target_tensor)
    assert out.shape == (2 * 4 * 16 * 16,)
    assert jnp.allclose(out, ref, atol=1e-5, rtol=1e-5), "mismatch vs reference"

    # Also exercise the unaligned-N (ragged tail) path with narrow targets.
    shape2 = (3, 7, 47)  # 987 elements -> padded to 1024 internally
    s2 = jax.random.normal(k3, shape2, dtype=jnp.float32)
    t2 = jax.random.randint(k4, shape2, 0, 2, dtype=jnp.int32).astype(jnp.int8)
    out2 = jax.block_until_ready(binary_cross_entropy_loss(s2, t2))
    ref2 = _reference(s2, t2)
    assert out2.shape == (3 * 7 * 47,)
    assert jnp.allclose(out2, ref2, atol=1e-5, rtol=1e-5), "mismatch (ragged)"

    print("KERNEL_OK")
</pallas_src>

<mosaic_0001>
module attributes {stable_mosaic.version = 11 : i64} {
  func.func @_bce_kernel(%arg0: i32, %arg1: memref<16x128xf32, #tpu.memory_space<vmem>>, %arg2: memref<16x128xi32, #tpu.memory_space<vmem>>, %arg3: memref<16x128xf32, #tpu.memory_space<vmem>>) attributes {dimension_semantics = [#tpu.dimension_semantics<parallel>], iteration_bounds = array<i64: 1>, scalar_prefetch = 0 : i64, scratch_operands = 0 : i64, tpu.core_type = #tpu.core_type<tc>, window_params = [{transform_indices = @transform_0, window_bounds = array<i64: 16, 128>}, {transform_indices = @transform_1, window_bounds = array<i64: 16, 128>}, {transform_indices = @transform_2, window_bounds = array<i64: 16, 128>}]} {
    %c0 = arith.constant 0 : index
    %c0_0 = arith.constant 0 : index
    %0 = vector.load %arg1[%c0, %c0_0] : memref<16x128xf32, #tpu.memory_space<vmem>>, vector<16x128xf32>
    %c0_1 = arith.constant 0 : index
    %c0_2 = arith.constant 0 : index
    %1 = vector.load %arg2[%c0_1, %c0_2] : memref<16x128xi32, #tpu.memory_space<vmem>>, vector<16x128xi32>
    %c0_i32 = arith.constant 0 : i32
    %2 = vector.broadcast %c0_i32 : i32 to vector<16x128xi32>
    %3 = arith.cmpi ne, %1, %2 : vector<16x128xi32>
    %cst = arith.constant 0.000000e+00 : f32
    %4 = vector.broadcast %cst : f32 to vector<16x128xf32>
    %5 = arith.select %3, %0, %4 : vector<16x128xi1>, vector<16x128xf32>
    %cst_3 = arith.constant 0.000000e+00 : f32
    %6 = vector.broadcast %cst_3 : f32 to vector<16x128xf32>
    %7 = arith.maximumf %0, %6 : vector<16x128xf32>
    %8 = math.absf %0 : vector<16x128xf32>
    %cst_4 = arith.constant 0.000000e+00 : f32
    %9 = vector.broadcast %cst_4 : f32 to vector<16x128xf32>
    %10 = arith.subf %9, %8 : vector<16x128xf32>
    %11 = math.exp %10 : vector<16x128xf32>
    %12 = math.log1p %11 : vector<16x128xf32>
    %13 = arith.addf %7, %12 : vector<16x128xf32>
    %14 = arith.subf %13, %5 : vector<16x128xf32>
    %c0_5 = arith.constant 0 : index
    %c0_6 = arith.constant 0 : index
    %15 = vector.load %arg3[%c0_5, %c0_6] : memref<16x128xf32, #tpu.memory_space<vmem>>, vector<16x128xf32>
    tpu.vector_store %arg3[%c0_5, %c0_6], %14 {strides = array<i32>} : memref<16x128xf32, #tpu.memory_space<vmem>>, vector<16x128xf32>,
    return
  }
  func.func @transform_0(%arg0: i32) -> (i32, i32) {
    %c0_i32 = arith.constant 0 : i32
    %c0_i32_0 = arith.constant 0 : i32
    return %arg0, %c0_i32 : i32, i32
  }
  func.func @transform_1(%arg0: i32) -> (i32, i32) {
    %c0_i32 = arith.constant 0 : i32
    %c0_i32_0 = arith.constant 0 : i32
    return %arg0, %c0_i32 : i32, i32
  }
  func.func @transform_2(%arg0: i32) -> (i32, i32) {
    %c0_i32 = arith.constant 0 : i32
    %c0_i32_0 = arith.constant 0 : i32
    return %arg0, %c0_i32 : i32, i32
  }
}

</mosaic_0001>

<bundles_post_ra>
// kernel: tpu_custom_call.1
= control target key start
LH: loop header
LB: loop body
LE: loop exit
PB: predicated region body
PF: predicated region fallthrough
CT: control target
= control target key end

     0   :  { %7 = vsyncpa [#allocation3], 0  ;;  %s235_s0 = inlined_call_operand.hbm [shape: f32[16,128], index: 0, kind: input, shape index: {}]   ;;  %s236_s1 = inlined_call_operand.hbm [shape: s32[16,128], index: 1, kind: input, shape index: {}]   ;;  %s237_s2 = inlined_call_operand.hbm [shape: f32[16,128], index: 2, kind: output, shape index: {}]  }
   0x1   :  { %8 = vsyncpa [#allocation6], 0 }
   0x2   :  { %9 = vsyncpa [#allocation4], 0  ;;  %s14_s11 = sshll.u32 %s235_s0, 4  ;;  %s197_s12 = smov [#allocation2]   ;;  %s15_s11 = int_to_ptr.hbm [resolvable:$true] %s14_s11 }
   0x3   :  { %s16_s13 = sshll.u32 %s197_s12, 4  ;;  %s27_s16 = sshll.u32 %s236_s1, 4  ;;  %s17_s13 = int_to_ptr.vmem [resolvable:$true] %s16_s13  ;;  %s28_s16 = int_to_ptr.hbm [resolvable:$true] %s27_s16 }
   0x4   :  { %s198_s17 = smov 128   ;;  %s199_s18 = smov 8  }
   0x5   :  { %22 = dma.hbm_to_vmem [thread:$0]  %s15_s11, 256, %s17_s13, [#allocation3], %s198_s17, %s198_s17, %s199_s18  }
   0x6   :  { %s200_s19 = smov [#allocation5]  }
   0x7   :  { %s29_s20 = sshll.u32 %s200_s19, 4  ;;  %s30_s20 = int_to_ptr.vmem [resolvable:$true] %s29_s20 }
   0x8   :  { %35 = dma.hbm_to_vmem [thread:$0]  %s28_s16, 256, %s30_s20, [#allocation6], %s198_s17, %s198_s17, %s199_s18  }
   0x9   :  { %191 = dma.done.wait [#allocation3], 256  }
   0xa   :  { %192 = vsyncadd [#allocation3], 4294967040 }
   0xb   :  { %193 = dma.done.wait [#allocation6], 256  }
   0xc   :  { %194 = vsyncadd [#allocation6], 4294967040  ;;  %v44_v0 = vld [vmem:[#allocation2] sm:$0xff]  ;;  %v45_v1 = vld [vmem:[#allocation2 + $0x8] sm:$0xff]  ;;  %s201_s0 = smov [#allocation7]   ;;  %s92_s23 = sshll.u32 %s237_s2, 4  ;;  %s93_s23 = int_to_ptr.hbm [resolvable:$true] %s92_s23 }
   0xd   :  { %v54_v2 = vand.u32 2147483647, %v44_v0  ;;  %v55_v3 = vand.u32 2147483647, %v45_v1  ;;  %v46_v17 = vld [vmem:[#allocation5] sm:$0xff]  ;;  %v47_v19 = vld [vmem:[#allocation5 + $0x8] sm:$0xff] }
   0xe   :  { %vm48_vm0 = vcmp.ne.s32.totalorder %v46_v17, 0  ;;  %v52_v22 = vmax.f32 %v44_v0, 0.0  ;;  %vm49_vm2 = vcmp.ne.s32.totalorder %v47_v19, 0  ;;  %v53_v26 = vmax.f32 %v45_v1, 0.0  ;;  %s90_s1 = sshll.u32 %s201_s0, 4  ;;  %s91_s1 = int_to_ptr.vmem [resolvable:$true] %s90_s1 }
   0xf   :  { %v56_v4 = vsub.f32 0.0, %v54_v2  ;;  %v57_v5 = vsub.f32 0.0, %v55_v3  ;;  %v50_v28 = vsel %vm48_vm0, %v44_v0, 0.0  ;;  %v51_v31 = vsel %vm49_vm2, %v45_v1, 0.0 }
  0x11   :  { %v58_v6 = vmul.f32 1.442695, %v56_v4  ;;  %v60_v7 = vmul.f32 1.442695, %v57_v5 }
  0x13   :  { %111 = vpow2.f32 %v58_v6 }
  0x14   :  { %113 = vpow2.f32 %v60_v7 }
  0x19   :  { %v112_v8 = vpop.eup %111 }
  0x1a   :  { %v114_v9 = vpop.eup %113  ;;  %v62_v10 = vadd.f32 1.0, %v112_v8  ;;  %v65_v11 = vmul.f32 -0.5, %v112_v8  ;;  %v68_v15 = vand.u32 2147483647, %v112_v8 }
  0x1b   :  { %v71_v12 = vadd.f32 1.0, %v114_v9  ;;  %v74_v13 = vmul.f32 -0.5, %v114_v9  ;;  %v77_v18 = vand.u32 2147483647, %v114_v9 }
  0x1c   :  { %115 = vlog2.f32 %v62_v10  ;;  %v66_v14 = vadd.f32 1.0, %v65_v11  ;;  %vm69_vm1 = vcmp.lt.f32.partialorder %v68_v15, 0.0004427343 }
  0x1d   :  { %117 = vlog2.f32 %v71_v12  ;;  %v75_v16 = vadd.f32 1.0, %v74_v13  ;;  %vm78_vm3 = vcmp.lt.f32.partialorder %v77_v18, 0.0004427343 }
  0x1e   :  { %v67_v20 = vmul.f32 %v112_v8, %v66_v14 }
  0x1f   :  { %v76_v23 = vmul.f32 %v114_v9, %v75_v16 }
  0x22   :  { %v116_v21 = vpop.eup %115 }
  0x23   :  { %v118_v24 = vpop.eup %117  ;;  %v64_v25 = vmul.f32 0.6931472, %v116_v21 }
  0x24   :  { %v73_v27 = vmul.f32 0.6931472, %v118_v24 }
  0x25   :  { %v70_v29 = vsel %vm69_vm1, %v67_v20, %v64_v25 }
  0x26   :  { %v80_v30 = vadd.f32 %v70_v29, %v52_v22  ;;  %v79_v32 = vsel %vm78_vm3, %v76_v23, %v73_v27 }
  0x27   :  { %v81_v33 = vadd.f32 %v79_v32, %v53_v26 }
  0x28   :  { %v82_v34 = vsub.f32 %v80_v30, %v50_v28 }
  0x29   :  { %v83_v35 = vsub.f32 %v81_v33, %v51_v31 }
  0x2a   :  { %84 = vst [vmem:[#allocation7] sm:$0xff] %v82_v34 }
  0x2b   :  { %85 = vst [vmem:[#allocation7 + $0x8] sm:$0xff] %v83_v35 }
  0x2c   :  { %98 = dma.vmem_to_hbm [thread:$0]  %s91_s1, 256, %s93_s23, [#allocation4], %s198_s17, %s198_s17, %s199_s18  }
  0x2d   :  { %195 = dma.done.wait [#allocation4], 256  }
  0x2e   :  { %196 = vsyncadd [#allocation4], 4294967040 }
  0x2f   :  { %103 = vsyncpa [#allocation3], 1 }
  0x30   :  { %104 = vsyncpa [#allocation6], 1 }
  0x31   :  { %105 = vsyncpa [#allocation4], 1 }

</bundles_post_ra>
